<compile_context>
chip_gen: v6e
topology: v6e:2x2x1
jax: 0.10.0
libtpu: 0.0.40
codegen_flags: <defaults>
</compile_context>

<pallas_src>
import math

import jax
import jax.numpy as jnp
from jax.experimental import pallas as pl
from jax.experimental.pallas import tpu as pltpu


def _round_up(n: int, m: int) -> int:
    return ((n + m - 1) // m) * m


def make_positional_encoding(d_model: int, max_len: int = 5000) -> jnp.ndarray:
    """Sinusoidal table, identical math to the PyTorch __init__.

    Returns pe with shape (max_len, 1, d_model), float32 (the registered buffer).
    """
    assert d_model % 2 == 0, "d_model must be even"
    position = jnp.arange(0, max_len, dtype=jnp.float32)[:, None]            # (L, 1)
    div_term = jnp.exp(
        jnp.arange(0, d_model, 2, dtype=jnp.float32)
        * (-math.log(10000.0) / d_model)
    )                                                                         # (D/2,)
    pe = jnp.zeros((max_len, d_model), dtype=jnp.float32)
    pe = pe.at[:, 0::2].set(jnp.sin(position * div_term))
    pe = pe.at[:, 1::2].set(jnp.cos(position * div_term))
    return pe[:, None, :]                                                     # (L, 1, D)


def _pe_add_kernel(x_ref, pe_ref, o_ref):
    # x_ref / o_ref: (tile_s, B, tile_d); pe_ref: (tile_s, tile_d) float32
    # (the size-1 batch dim of pe is squeezed out by its BlockSpec).
    x = x_ref[...].astype(jnp.float32)
    pe = pe_ref[...]
    o_ref[...] = (x + pe[:, None, :]).astype(o_ref.dtype)


def positional_encoding_forward(
    x: jnp.ndarray,
    pe: jnp.ndarray,
    *,
    out_dtype=None,
    vmem_budget_bytes: int = 24 * 1024 * 1024,
) -> jnp.ndarray:
    """Computes x + pe[:x.shape[0]] with a tiled Pallas TPU kernel.

    x:  (seq_len, batch, d_model)
    pe: (max_len, 1, d_model) float32 buffer (full table; rows are selected by
        the BlockSpec index_map, no wrapper-side slicing).
    out_dtype: None -> PyTorch promotion (result_type(x, pe), i.e. float32).
        Pass x.dtype for bf16/fp16 inputs to halve output store bandwidth.
    """
    S, B, D = x.shape
    max_len = pe.shape[0]
    assert pe.shape == (max_len, 1, D)
    assert S <= max_len

    if out_dtype is None:
        out_dtype = jnp.result_type(x.dtype, pe.dtype)

    # ---- VMEM accounting with real (8,128)-tiled layouts --------------------
    def _sublane(dtype):
        # sublane multiple: 8 for 32-bit, 16 for 16-bit, 32 for 8-bit dtypes.
        return 8 * max(1, 4 // jnp.dtype(dtype).itemsize)

    def _xo_row_bytes(tile_d):
        # one seq row of the x block plus one of the out block, padded layout.
        pd = _round_up(tile_d, 128)
        bx = _round_up(B, _sublane(x.dtype)) * pd * jnp.dtype(x.dtype).itemsize
        bo = _round_up(B, _sublane(out_dtype)) * pd * jnp.dtype(out_dtype).itemsize
        return bx + bo

    def _pe_block_bytes(tile_s, tile_d):
        # pe tile is 2-D (tile_s, tile_d) float32 after squeezing the size-1 dim.
        return _round_up(tile_s, 8) * _round_up(tile_d, 128) * 4

    def _working_set(tile_s, tile_d):
        # x, out and pe tiles are each double-buffered by the pipeline.
        return 2 * (tile_s * _xo_row_bytes(tile_d) + _pe_block_bytes(tile_s, tile_d))

    # ---- d_model tile: keep full D (contiguous DMAs, pe fetched once) unless
    #      even 8 seq rows would blow the budget; then split in 128 multiples.
    tile_d = D
    if D % 128 == 0 and _working_set(8, D) > vmem_budget_bytes:
        tile_d = 128
        while tile_d * 2 <= D and _working_set(8, tile_d * 2) <= vmem_budget_bytes:
            tile_d *= 2
    # TODO(synk): for d_model < 128, fold batch into the lane dim (view x as
    # (S, B*D) and tile pe across batch) to get unmasked lane-dense stores;
    # skipped here to keep the kernel free of in-kernel reshapes.

    # ---- seq tile: fill the budget, multiple of 8 when possible. ------------
    per_row = 2 * (_xo_row_bytes(tile_d) + _round_up(tile_d, 128) * 4)
    tile_s = max(1, int(vmem_budget_bytes // per_row))
    if tile_s >= 8:
        tile_s -= tile_s % 8
    tile_s = min(tile_s, S)

    # ---- make sure v7x's two TensorCores both get a grid step. --------------
    if pl.cdiv(D, tile_d) == 1 and tile_s >= S and S > 1:
        half = pl.cdiv(S, 2)
        tile_s = min(S, _round_up(half, 8) if half > 8 else half)

    grid = (pl.cdiv(S, tile_s), pl.cdiv(D, tile_d))

    vmem_limit = int(max(_working_set(tile_s, tile_d) + (4 << 20), 16 << 20))

    return pl.pallas_call(
        _pe_add_kernel,
        out_shape=jax.ShapeDtypeStruct((S, B, D), out_dtype),
        grid=grid,
        in_specs=[
            pl.BlockSpec((tile_s, B, tile_d), lambda s, d: (s, 0, d)),
            # Squeeze pe's size-1 batch dim out of the block: the kernel sees a
            # 2-D (tile_s, tile_d) tile; only the needed rows are DMA'd.
            pl.BlockSpec((tile_s, None, tile_d), lambda s, d: (s, 0, d)),
        ],
        out_specs=pl.BlockSpec((tile_s, B, tile_d), lambda s, d: (s, 0, d)),
        compiler_params=pltpu.CompilerParams(
            dimension_semantics=("parallel", "parallel"),
            vmem_limit_bytes=vmem_limit,
        ),
    )(x, pe)


if __name__ == "__main__":
    d_model = 32
    max_len = 64
    seq_len = 8
    batch = 2

    key = jax.random.PRNGKey(0)
    x = jax.random.normal(key, (seq_len, batch, d_model), dtype=jnp.float32)

    pe = make_positional_encoding(d_model, max_len)

    out = jax.block_until_ready(positional_encoding_forward(x, pe))

    # Reference check (pure JAX, same math as the PyTorch forward).
    ref = x + pe[:seq_len, :]
    assert out.shape == (seq_len, batch, d_model)
    assert out.dtype == ref.dtype
    assert jnp.allclose(out, ref, atol=1e-6, rtol=1e-6), "mismatch vs reference"

    print("KERNEL_OK")
</pallas_src>

<mosaic_0001>
module attributes {stable_mosaic.version = 11 : i64} {
  func.func @_pe_add_kernel(%arg0: i32, %arg1: i32, %arg2: memref<4x2x32xf32, #tpu.memory_space<vmem>>, %arg3: memref<4x1x32xf32, #tpu.memory_space<vmem>>, %arg4: memref<4x2x32xf32, #tpu.memory_space<vmem>>) attributes {dimension_semantics = [#tpu.dimension_semantics<parallel>, #tpu.dimension_semantics<parallel>], iteration_bounds = array<i64: 2, 1>, scalar_prefetch = 0 : i64, scratch_operands = 0 : i64, tpu.core_type = #tpu.core_type<tc>, window_params = [{transform_indices = @transform_0, window_bounds = array<i64: 4, 2, 32>}, {transform_indices = @transform_1, window_bounds = array<i64: 4, 1, 32>}, {transform_indices = @transform_2, window_bounds = array<i64: 4, 2, 32>}]} {
    %c0 = arith.constant 0 : index
    %c0_0 = arith.constant 0 : index
    %c0_1 = arith.constant 0 : index
    %0 = vector.load %arg2[%c0, %c0_0, %c0_1] : memref<4x2x32xf32, #tpu.memory_space<vmem>>, vector<4x2x32xf32>
    %c0_2 = arith.constant 0 : index
    %c0_3 = arith.constant 0 : index
    %c0_4 = arith.constant 0 : index
    %1 = vector.load %arg3[%c0_2, %c0_3, %c0_4] : memref<4x1x32xf32, #tpu.memory_space<vmem>>, vector<4x1x32xf32>
    %2 = vector.shape_cast %1 : vector<4x1x32xf32> to vector<4x32xf32>
    %3 = vector.shape_cast %2 : vector<4x32xf32> to vector<4x1x32xf32>
    %4 = vector.broadcast %3 : vector<4x1x32xf32> to vector<4x2x32xf32>
    %5 = arith.addf %0, %4 : vector<4x2x32xf32>
    %c0_5 = arith.constant 0 : index
    %c0_6 = arith.constant 0 : index
    %c0_7 = arith.constant 0 : index
    %6 = vector.load %arg4[%c0_5, %c0_6, %c0_7] : memref<4x2x32xf32, #tpu.memory_space<vmem>>, vector<4x2x32xf32>
    tpu.vector_store %arg4[%c0_5, %c0_6, %c0_7], %5 {strides = array<i32>} : memref<4x2x32xf32, #tpu.memory_space<vmem>>, vector<4x2x32xf32>,
    return
  }
  func.func @transform_0(%arg0: i32, %arg1: i32) -> (i32, i32, i32) {
    %c0_i32 = arith.constant 0 : i32
    %c0_i32_0 = arith.constant 0 : i32
    return %arg0, %c0_i32, %arg1 : i32, i32, i32
  }
  func.func @transform_1(%arg0: i32, %arg1: i32) -> (i32, i32, i32) {
    %c0_i32 = arith.constant 0 : i32
    %c0_i32_0 = arith.constant 0 : i32
    return %arg0, %c0_i32, %arg1 : i32, i32, i32
  }
  func.func @transform_2(%arg0: i32, %arg1: i32) -> (i32, i32, i32) {
    %c0_i32 = arith.constant 0 : i32
    %c0_i32_0 = arith.constant 0 : i32
    return %arg0, %c0_i32, %arg1 : i32, i32, i32
  }
}

</mosaic_0001>

<bundles_post_ra>
// kernel: tpu_custom_call.1
= control target key start
LH: loop header
LB: loop body
LE: loop exit
PB: predicated region body
PF: predicated region fallthrough
CT: control target
= control target key end

     0   :  { %7 = vsyncpa [#allocation3], 0  ;;  %s639_s0 = inlined_call_operand.vmem [shape: f32[8,2,32], index: 0, kind: input, shape index: {}]   ;;  %s640_s1 = inlined_call_operand.vmem [shape: f32[64,1,32], index: 1, kind: input, shape index: {}]   ;;  %s641_s2 = inlined_call_operand.hbm [shape: f32[8,2,32], index: 2, kind: output, shape index: {}]  }
   0x1   :  { %9 = vsyncpa [#allocation3 + $0x1], 0  ;;  %s515_s9 = smov 0   ;;  %s517_s10 = smov 0  }
   0x2   :  { %s519_s11 = smov 0   ;;  %s521_s12 = smov 0  }
   0x3   :  { %s523_s13 = smov 0   ;;  %s525_s14 = smov 0  }
   0x4 LB: > { %s343_s15 = sadd.s32 4294967295, %s495_s14   ;;  %s344_s16 = sadd.s32 4294967294, %s495_s14   ;;  %s495_s14 = sphi %s525_s14, %s15_s14   ;;  %s491_s13 = sphi %s523_s13, %s648_s13   ;;  %s487_s12 = sphi %s521_s12, %s647_s12   ;;  %s483_s11 = sphi %s519_s11, %s646_s11   ;;  %s479_s10 = sphi %s517_s10, %s645_s10   ;;  %s475_s9 = sphi %s515_s9, %s644_s9  }
   0x5   : > { %s27_s17 = sadd.s32 1, %s491_s13  ;;  %s92_s18 = sadd.s32 1, %s483_s11 }
   0x6   : > { %p29_p0 = scmp.ge.s32.totalorder %s27_s17, 2  ;;  %p102_p1 = scmp.ne.s32.totalorder %s483_s11, %s479_s10 }
   0x7   : > { %p103_p2 = scmp.eq.s32.totalorder %s343_s15, 1  ;;  %p108_p3 = scmp.ne.s32.totalorder %s479_s10, %s475_s9 }
   0x8   : > { %s650_s17 = smov (%p29_p0, %s27_s17), 0  ;;  %p109_p5 = scmp.eq.s32.totalorder %s344_s16, 1 }
   0x9   : > { %p555_p4 = por %p103_p2, %p102_p1  ;;  %s87_s20 = ssub.s32 %s491_s13, %s650_s17 }
   0xa   : > { %p347_p6 = scmp.ge.s32.totalorder %s495_s14, 1  ;;  %p90_p7 = scmp.eq.s32.totalorder %s87_s20, 0 }
   0xb   : > { %p562_p8 = por %p109_p5, %p108_p3  ;;  %p150_p9 = scmp.lt.s32.totalorder %s495_s14, 3 }
   0xc   : > { %s568_s22 = scalar_select %p90_p7, %s483_s11, %s92_s18  }
   0xd   : > { %p151_p10 = pnand %p347_p6, %p150_p9 }
   0xe   : > { %s179_s23 = sand.u32 (!%p151_p10), 1, %s479_s10   ;;  %s349_s24 = sshll.u32 (!%p151_p10), %s487_s12, 2 }
   0xf   : > { %154 = sbr.rel (%p151_p10) target bundleno = 47 (0x2f), region = 28  ;;  %s348_s25 = sshll.u32 (!%p151_p10), %s179_s23, 3 }
  0x10   : > { %p183_p11 = scmp.lt.s32.totalorder (!%p151_p10), %s349_s24, 7  ;;  %p192_p12 = scmp.lt.s32.totalorder (!%p151_p10), %s349_s24, 63 }
  0x11   : > { %s181_s6 = scalar_lea.vmem (!%p151_p10), [#allocation2], %s348_s25  ;;  %s361_s8 = sshll.u32 (!%p151_p10), %s487_s12, 7 }
  0x12   : > { %s256_s7 = sshll.u32 (!%p151_p10), %s181_s6, 4  ;;  %s586_s18 = scalar_lea.hbm (!%p151_p10), %s641_s2, %s361_s8  ;;  %s581_s7 = int_to_ptr.vmem [resolvable:$true] %s256_s7 }
  0x13   : > { %s594_s12 = scalar_lea.sflag (!%p151_p10), [#allocation3], %s179_s23  ;;  %s419_s20 = scalar_lea.vmem (!%p151_p10), %s581_s7, 128 }
  0x14   : > { %s184_s26 = scalar_select %p183_p11, %s349_s24, 7  ;;  %vm236_vm0 = vcmask 254976  }
  0x15   : > { %s652_s24 = smov (!%p192_p12, %s349_s24), 63  ;;  %p420_p13 = scmp.ne.s32.totalorder %s581_s7, %s419_s20 }
  0x16   : > { %s350_s27 = sshll.u32 %s184_s26, 1  ;;  %s197_s5 = scalar_lea.vmem %s640_s1, %s652_s24 }
  0x17   : > { %s189_s30 = scalar_lea.vmem %s639_s0, %s350_s27  ;;  %v352_v1 = vld [vmem:[%s197_s5] ss:$0 sm:$0xff]  ;;  %v353_v4 = vld [vmem:[%s197_s5 + $0x1] ss:$0 sm:$0xff]  ;;  %v354_v7 = vld [vmem:[%s197_s5 + $0x2] ss:$0 sm:$0xff]  ;;  %p421_p0 = pnand %p420_p13, %p555_p4 }
  0x18   : > { %v200_v0 = vld [vmem:[%s189_s30] sm:$0x3]  ;;  %v201_v3 = vld [vmem:[%s189_s30 + $0x2] sm:$0x3]  ;;  %v202_v5 = vld [vmem:[%s189_s30 + $0x4] sm:$0x3] }
  0x19   : > { %v232_v2 = vadd.f32 %v352_v1, %v200_v0  ;;  %v233_v6 = vadd.f32 %v353_v4, %v201_v3  ;;  %v203_v8 = vld [vmem:[%s189_s30 + $0x6] sm:$0x3]  ;;  %v355_v9 = vld [vmem:[%s197_s5 + $0x3] ss:$0 sm:$0xff]  ;;  %v234_v10 = vadd.f32 %v354_v7, %v202_v5  ;;  %p422_p1 = pneg %p421_p0  ;;  %s497_s24 = smov [#allocation2]  }
  0x1a   : > { %v235_v11 = vadd.f32 %v355_v9, %v203_v8  ;;  %s423_s25 = sshll.u32 %s497_s24, 4  ;;  %s424_s25 = int_to_ptr.vmem [resolvable:$false] %s423_s25 }
  0x1b   : > { %237 = vst.msk [vmem:[%s181_s6] sm:$0x3] %vm236_vm0, %v232_v2  ;;  %238 = vst.msk [vmem:[%s181_s6 + $0x2] sm:$0x3] %vm236_vm0, %v233_v6  ;;  %s425_s26 = scalar_lea.vmem %s424_s25, 256  ;;  %p426_p2 = scmp.lt.s32.totalorder %s581_s7, %s424_s25 }
  0x1c   : > { %239 = vst.msk [vmem:[%s181_s6 + $0x4] sm:$0x3] %vm236_vm0, %v234_v10  ;;  %240 = vst.msk [vmem:[%s181_s6 + $0x6] sm:$0x3] %vm236_vm0, %v235_v11  ;;  %p427_p3 = scmp.lt.s32.totalorder %s425_s26, %s419_s20 }
  0x1e   : > { %p428_p5 = por %p427_p3, %p426_p2 }
  0x20   : > { %p429_p6 = pnand %p428_p5, %p422_p1 }
  0x22   : > { %432 = shalt.err (!%p429_p6)
}
  0x23   : > { %s433_s23 = scalar_lea.hbm %s586_s18, 128  ;;  %s437_s29 = scalar_lea.hbm %s641_s2, 256 }
  0x24   : > { %p434_p7 = scmp.ne.s32.totalorder %s586_s18, %s433_s23  ;;  %p438_p11 = scmp.lt.s32.totalorder %s586_s18, %s641_s2 }
  0x25   : > { %p439_p12 = scmp.lt.s32.totalorder %s437_s29, %s433_s23 }
  0x26   : > { %p435_p9 = pnand %p434_p7, %p555_p4 }
  0x27   : > { %p440_p13 = por %p439_p12, %p438_p11 }
  0x28   : > { %p436_p10 = pneg %p435_p9 }
  0x2a   : > { %p441_p0 = pnand %p440_p13, %p436_p10 }
  0x2c   : > { %444 = shalt.err (!%p441_p0)
}
  0x2d   : > { %s498_s4 = smov 32   ;;  %s499_s5 = smov 2  }
  0x2e   : > { %362 = dma.vmem_to_hbm [thread:$0]  (%p555_p4), %s581_s7, 128, %s586_s18, %s594_s12, %s498_s4, %s498_s4, %s499_s5  }
  0x2f PF: > { %p368_p1 = scmp.ge.s32.totalorder %s495_s14, 2  ;;  %s271_s6 = sand.u32 1, %s475_s9  }
  0x30   : > { %s272_s8 = scalar_lea.sflag [#allocation3], %s271_s6 }
  0x31   : > { %p365_p2 = pnand %p368_p1, %p562_p8 }
  0x33   : > { %p366_p3 = pneg %p365_p2 }
  0x35   : > { %470 = dma.done.wait (%p366_p3), %s272_s8, 128  }
  0x36   : > { %472 = vsyncadd (%p366_p3), %s272_s8, 4294967168  ;;  %s15_s14 = sadd.s32 1, %s495_s14   ;;  %s644_s9 = smov %s479_s10 }
  0x37   : > { %p12_p5 = scmp.ge.s32.totalorder %s15_s14, 4   ;;  %s645_s10 = smov %s483_s11 }
  0x38   : > { %s646_s11 = smov %s568_s22  ;;  %s647_s12 = smov %s491_s13 }
  0x39   : > { %s648_s13 = smov %s650_s17  ;;  %14 = sbr.rel (!%p12_p5) target bundleno = 4 (0x4), region = 66 }
  0x3e   :  { %277 = vsyncpa [#allocation3], 1 }
  0x3f   :  { %279 = vsyncpa [#allocation3 + $0x1], 1 }

</bundles_post_ra>
